<compile_context>
chip_gen: v6e
topology: v6e:2x2x1
jax: 0.10.0
libtpu: 0.0.40
codegen_flags: <defaults>
</compile_context>

<pallas_src>
import jax
import jax.numpy as jnp
from jax.experimental import pallas as pl
from jax.experimental.pallas import tpu as pltpu

K_MAX = 13
PAD = K_MAX // 2           # 6
KERNEL_SIZES = (3, 5, 7, 13)
OUT_PER_BRANCH = 32
OUT_CH = OUT_PER_BRANCH * len(KERNEL_SIZES)   # 128


def _round_up(x, m):
    return ((x + m - 1) // m) * m


def _mscnn_kernel(xp_ref, w_ref, b_ref, o_ref):
    # xp_ref: (B_tile, Lpad, C_in)  f32, NLC, halo + alignment pre-padded (Lpad % 8 == 0)
    # w_ref : (13*C_in, 128)        bf16 im2col weight (row index = k*C_in + c)
    # b_ref : (1, 128)              f32 combined bias
    # o_ref : (B_tile, L, 128)      f32 output, NLC
    B, Lp, C = xp_ref.shape
    L = o_ref.shape[1]
    R = B * Lp

    # Flattened-batch im2col: per-batch halos keep conv windows from mixing
    # batches; the junk window rows at each batch's tail are discarded below.
    xf = xp_ref[...].reshape(R, C)                          # (R, C) f32

    # 13 tap shifts on the XLU (roll), each cast to bf16 so the big im2col
    # concat intermediate and the MXU operands are bf16 (f32 accumulation).
    taps = []
    for k in range(K_MAX):                                  # static, small
        t = xf if k == 0 else pltpu.roll(xf, shift=R - k, axis=0)
        taps.append(t.astype(jnp.bfloat16))

    # Tap-group dots: keep each contraction depth <= ~512 so large C_in does not
    # blow up the (rows, 13*C) im2col intermediate; one dot for small C_in.
    taps_per_dot = max(1, min(K_MAX, 512 // max(C, 1)))
    acc = None
    for g0 in range(0, K_MAX, taps_per_dot):                # static
        g = taps[g0:g0 + taps_per_dot]
        patch = jnp.concatenate(g, axis=-1) if len(g) > 1 else g[0]
        w_g = w_ref[g0 * C:(g0 + len(g)) * C, :]
        part = jnp.dot(patch, w_g, preferred_element_type=jnp.float32)
        acc = part if acc is None else acc + part           # (R, 128) f32

    y = jnp.maximum(acc + b_ref[...], 0.0)                  # bias + ReLU (f32)

    # Drop the per-batch halo/junk rows (Lp multiple of 8 -> aligned slice) and
    # store lane-dense 128-wide rows.
    o_ref[...] = y.reshape(B, Lp, OUT_CH)[:, :L, :].astype(o_ref.dtype)


def _vmem_budget_bytes():
    """Scoped VMEM limit for the kernel + the planning budget underneath it."""
    try:
        cap = pltpu.get_tpu_info().vmem_capacity_bytes      # 64 MiB v7x, 128 MiB v5e/v6e
    except Exception:
        cap = 64 * 1024 * 1024                              # conservative (v7x) fallback
    limit = min(100 * 1024 * 1024, (cap * 3) // 4)          # ~48 MiB v7x, ~96 MiB v5e/v6e
    budget = (limit * 3) // 4                               # headroom for compiler temps
    return limit, budget


def _pick_batch_tile(N, L, Lp, C, budget):
    """Largest divisor of N (capped at N//2 so v7x's 2 TensorCores both get grid
    steps) whose per-step footprint fits `budget`; aim for >=1024 rows per dot so
    the 13*C-deep matmul amortizes weight pushes on the 256-wide v6e/v7x MXU."""
    target_rows = 1024
    cap = max(1, N // 2)
    best = 1
    for bt in range(1, cap + 1):
        if N % bt:
            continue
        rows = bt * Lp
        est = (2 * bt * Lp * C * 4                          # input block (f32, dbl buf)
               + 2 * bt * L * OUT_CH * 4                    # output block (f32, dbl buf)
               + 2 * (K_MAX * C * OUT_CH * 2 + OUT_CH * 4)  # weights + bias (dbl buf)
               + K_MAX * rows * C * 4                       # 13 f32 rolled taps
               + 2 * K_MAX * rows * C * 2                   # bf16 taps + im2col concat
               + 2 * rows * OUT_CH * 4)                     # f32 dot result + relu copy
        if est > budget:
            break
        best = bt
        if rows >= target_rows:
            break
    # NOTE: bt=1 over budget => L itself too large; needs the L-tiling TODO.
    return best


def multi_scale_cnn(x_ncl, w_flat, b_comb, *, channels_last=False):
    """x_ncl: (N, C_in, L) f32 -> (N, 128, L) f32 (PyTorch layout),
    or (N, L, 128) when channels_last=True (skips the extra HBM transpose)."""
    N, C_in, L = x_ncl.shape
    Lp = _round_up(L + 2 * PAD, 8)

    # Glue pass (fuses in XLA): NCL -> NLC so channels land on lanes, plus the
    # 6-left / (Lp-L-6)-right halo + alignment padding of the length axis.
    x_nlc = jnp.transpose(x_ncl, (0, 2, 1))
    xp = jnp.pad(x_nlc, ((0, 0), (PAD, Lp - L - PAD), (0, 0)))

    vmem_limit, budget = _vmem_budget_bytes()
    b_tile = _pick_batch_tile(N, L, Lp, C_in, budget)

    out_nlc = pl.pallas_call(
        _mscnn_kernel,
        out_shape=jax.ShapeDtypeStruct((N, L, OUT_CH), jnp.float32),
        grid_spec=pltpu.PrefetchScalarGridSpec(
            num_scalar_prefetch=0,
            grid=(N // b_tile,),
            in_specs=[
                pl.BlockSpec((b_tile, Lp, C_in), lambda n: (n, 0, 0)),
                pl.BlockSpec((K_MAX * C_in, OUT_CH), lambda n: (0, 0)),
                pl.BlockSpec((1, OUT_CH), lambda n: (0, 0)),
            ],
            out_specs=pl.BlockSpec((b_tile, L, OUT_CH), lambda n: (n, 0, 0)),
        ),
        compiler_params=pltpu.CompilerParams(
            dimension_semantics=("parallel",),
            vmem_limit_bytes=vmem_limit,
        ),
    )(xp, w_flat, b_comb)

    if channels_last:
        return out_nlc
    # Glue: NLC -> NCL to match torch Conv1d / cat(dim=1) output layout.
    return jnp.transpose(out_nlc, (0, 2, 1))


def make_params(key, in_channels):
    """Per-branch Conv1d params (PyTorch shapes) + the fused im2col weight
    (13*C_in, 128) bf16 and bias (1, 128) f32 used by the kernel."""
    weights, biases = [], []
    for i, ks in enumerate(KERNEL_SIZES):
        kw, kb = jax.random.split(jax.random.fold_in(key, i))
        bound = 1.0 / jnp.sqrt(in_channels * ks)
        w = jax.random.uniform(kw, (OUT_PER_BRANCH, in_channels, ks),
                               jnp.float32, -bound, bound)
        b = jax.random.uniform(kb, (OUT_PER_BRANCH,),
                               jnp.float32, -bound, bound)
        weights.append(w)
        biases.append(b)

    w_combined = jnp.zeros((K_MAX, in_channels, OUT_CH), jnp.float32)
    b_combined = jnp.zeros((OUT_CH,), jnp.float32)
    for i, (ks, w, b) in enumerate(zip(KERNEL_SIZES, weights, biases)):
        off_tap = (K_MAX - ks) // 2          # center smaller kernels in 13 taps
        off_ch = i * OUT_PER_BRANCH
        w_kic = jnp.transpose(w, (2, 1, 0))  # (oc, ic, k) -> (k, ic, oc)
        w_combined = w_combined.at[off_tap:off_tap + ks, :,
                                   off_ch:off_ch + OUT_PER_BRANCH].set(w_kic)
        b_combined = b_combined.at[off_ch:off_ch + OUT_PER_BRANCH].set(b)

    # (13, C_in, 128) -> (13*C_in, 128): row index k*C_in + c matches the
    # in-kernel tap-concat column order.  bf16 for the MXU.
    w_flat = w_combined.reshape(K_MAX * in_channels, OUT_CH).astype(jnp.bfloat16)
    return weights, biases, w_flat, b_combined.reshape(1, OUT_CH)


def reference(x_ncl, weights, biases):
    """Pure-JAX reference matching the PyTorch module."""
    outs = []
    for w, b in zip(weights, biases):
        ks = w.shape[-1]
        y = jax.lax.conv_general_dilated(
            x_ncl, w, window_strides=(1,), padding=[(ks // 2, ks // 2)],
            dimension_numbers=("NCH", "OIH", "NCH"))
        outs.append(jnp.maximum(y + b[None, :, None], 0.0))
    return jnp.concatenate(outs, axis=1)


if __name__ == "__main__":
    key = jax.random.PRNGKey(0)
    kx, kp = jax.random.split(key)

    N, C_in, L = 2, 4, 16
    x = jax.random.normal(kx, (N, C_in, L), jnp.float32)

    weights, biases, w_comb, b_comb = make_params(kp, C_in)

    out = multi_scale_cnn(x, w_comb, b_comb)
    out = jax.block_until_ready(out)
    assert out.shape == (N, OUT_CH, L), out.shape

    # Tight check: reference with the same bf16 operand quantization as the
    # kernel (f32 accumulation everywhere) -> differences are summation order.
    xq = x.astype(jnp.bfloat16).astype(jnp.float32)
    wq = [w.astype(jnp.bfloat16).astype(jnp.float32) for w in weights]
    ref_q = reference(xq, wq, biases)
    err_q = float(jnp.max(jnp.abs(out - ref_q)))
    assert err_q < 1e-2, err_q

    # Loose check against the full-f32 PyTorch-equivalent reference
    # (bf16 operand rounding only).
    ref_f32 = reference(x, weights, biases)
    err_f = float(jnp.max(jnp.abs(out - ref_f32)))
    assert err_f < 6e-2, err_f

    print("KERNEL_OK")
</pallas_src>

<mosaic_0001>
module attributes {stable_mosaic.version = 11 : i64} {
  func.func @_mscnn_kernel(%arg0: i32, %arg1: memref<1x32x4xf32, #tpu.memory_space<vmem>>, %arg2: memref<52x128xbf16, #tpu.memory_space<vmem>>, %arg3: memref<1x128xf32, #tpu.memory_space<vmem>>, %arg4: memref<1x16x128xf32, #tpu.memory_space<vmem>>) attributes {dimension_semantics = [#tpu.dimension_semantics<parallel>], iteration_bounds = array<i64: 2>, scalar_prefetch = 0 : i64, scratch_operands = 0 : i64, tpu.core_type = #tpu.core_type<tc>, window_params = [{transform_indices = @transform_0, window_bounds = array<i64: 1, 32, 4>}, {pipeline_mode = #tpu.pipeline_mode<synchronous>, transform_indices = @transform_1, window_bounds = array<i64: 52, 128>}, {pipeline_mode = #tpu.pipeline_mode<synchronous>, transform_indices = @transform_2, window_bounds = array<i64: 1, 128>}, {transform_indices = @transform_3, window_bounds = array<i64: 1, 16, 128>}]} {
    %c0 = arith.constant 0 : index
    %c0_0 = arith.constant 0 : index
    %c0_1 = arith.constant 0 : index
    %0 = vector.load %arg1[%c0, %c0_0, %c0_1] : memref<1x32x4xf32, #tpu.memory_space<vmem>>, vector<1x32x4xf32>
    %1 = vector.shape_cast %0 : vector<1x32x4xf32> to vector<32x4xf32>
    %2 = arith.truncf %1 : vector<32x4xf32> to vector<32x4xbf16>
    %c31_i32 = arith.constant 31 : i32
    %3 = tpu.dynamic_rotate %1 by %c31_i32 dim 0 : vector<32x4xf32>, i32 -> vector<32x4xf32>
    %4 = arith.truncf %3 : vector<32x4xf32> to vector<32x4xbf16>
    %c30_i32 = arith.constant 30 : i32
    %5 = tpu.dynamic_rotate %1 by %c30_i32 dim 0 : vector<32x4xf32>, i32 -> vector<32x4xf32>
    %6 = arith.truncf %5 : vector<32x4xf32> to vector<32x4xbf16>
    %c29_i32 = arith.constant 29 : i32
    %7 = tpu.dynamic_rotate %1 by %c29_i32 dim 0 : vector<32x4xf32>, i32 -> vector<32x4xf32>
    %8 = arith.truncf %7 : vector<32x4xf32> to vector<32x4xbf16>
    %c28_i32 = arith.constant 28 : i32
    %9 = tpu.dynamic_rotate %1 by %c28_i32 dim 0 : vector<32x4xf32>, i32 -> vector<32x4xf32>
    %10 = arith.truncf %9 : vector<32x4xf32> to vector<32x4xbf16>
    %c27_i32 = arith.constant 27 : i32
    %11 = tpu.dynamic_rotate %1 by %c27_i32 dim 0 : vector<32x4xf32>, i32 -> vector<32x4xf32>
    %12 = arith.truncf %11 : vector<32x4xf32> to vector<32x4xbf16>
    %c26_i32 = arith.constant 26 : i32
    %13 = tpu.dynamic_rotate %1 by %c26_i32 dim 0 : vector<32x4xf32>, i32 -> vector<32x4xf32>
    %14 = arith.truncf %13 : vector<32x4xf32> to vector<32x4xbf16>
    %c25_i32 = arith.constant 25 : i32
    %15 = tpu.dynamic_rotate %1 by %c25_i32 dim 0 : vector<32x4xf32>, i32 -> vector<32x4xf32>
    %16 = arith.truncf %15 : vector<32x4xf32> to vector<32x4xbf16>
    %c24_i32 = arith.constant 24 : i32
    %17 = tpu.dynamic_rotate %1 by %c24_i32 dim 0 : vector<32x4xf32>, i32 -> vector<32x4xf32>
    %18 = arith.truncf %17 : vector<32x4xf32> to vector<32x4xbf16>
    %c23_i32 = arith.constant 23 : i32
    %19 = tpu.dynamic_rotate %1 by %c23_i32 dim 0 : vector<32x4xf32>, i32 -> vector<32x4xf32>
    %20 = arith.truncf %19 : vector<32x4xf32> to vector<32x4xbf16>
    %c22_i32 = arith.constant 22 : i32
    %21 = tpu.dynamic_rotate %1 by %c22_i32 dim 0 : vector<32x4xf32>, i32 -> vector<32x4xf32>
    %22 = arith.truncf %21 : vector<32x4xf32> to vector<32x4xbf16>
    %c21_i32 = arith.constant 21 : i32
    %23 = tpu.dynamic_rotate %1 by %c21_i32 dim 0 : vector<32x4xf32>, i32 -> vector<32x4xf32>
    %24 = arith.truncf %23 : vector<32x4xf32> to vector<32x4xbf16>
    %c20_i32 = arith.constant 20 : i32
    %25 = tpu.dynamic_rotate %1 by %c20_i32 dim 0 : vector<32x4xf32>, i32 -> vector<32x4xf32>
    %26 = arith.truncf %25 : vector<32x4xf32> to vector<32x4xbf16>
    %27 = tpu.concatenate %2, %4, %6, %8, %10, %12, %14, %16, %18, %20, %22, %24, %26 in 1 : vector<32x4xbf16>, vector<32x4xbf16>, vector<32x4xbf16>, vector<32x4xbf16>, vector<32x4xbf16>, vector<32x4xbf16>, vector<32x4xbf16>, vector<32x4xbf16>, vector<32x4xbf16>, vector<32x4xbf16>, vector<32x4xbf16>, vector<32x4xbf16>, vector<32x4xbf16> -> vector<32x52xbf16>
    %c0_2 = arith.constant 0 : index
    %c0_3 = arith.constant 0 : index
    %28 = vector.load %arg2[%c0_2, %c0_3] : memref<52x128xbf16, #tpu.memory_space<vmem>>, vector<52x128xbf16>
    %cst = arith.constant dense<0.000000e+00> : vector<32x128xf32>
    %29 = tpu.matmul %27, %28, %cst {dimension_numbers = #tpu.dot_dimension_numbers<[1], [0], [0], [1], [0, 0, 1, 1], [], []>} : vector<32x52xbf16>, vector<52x128xbf16>, vector<32x128xf32> -> vector<32x128xf32>
    %c0_4 = arith.constant 0 : index
    %c0_5 = arith.constant 0 : index
    %30 = vector.load %arg3[%c0_4, %c0_5] : memref<1x128xf32, #tpu.memory_space<vmem>>, vector<1x128xf32>
    %31 = vector.broadcast %30 : vector<1x128xf32> to vector<32x128xf32>
    %32 = arith.addf %29, %31 : vector<32x128xf32>
    %cst_6 = arith.constant 0.000000e+00 : f32
    %33 = vector.broadcast %cst_6 : f32 to vector<32x128xf32>
    %34 = arith.maximumf %32, %33 : vector<32x128xf32>
    %35 = vector.shape_cast %34 : vector<32x128xf32> to vector<1x32x128xf32>
    %36 = vector.extract_strided_slice %35 {offsets = [0, 0, 0], sizes = [1, 16, 128], strides = [1, 1, 1]} : vector<1x32x128xf32> to vector<1x16x128xf32>
    %c0_7 = arith.constant 0 : index
    %c0_8 = arith.constant 0 : index
    %c0_9 = arith.constant 0 : index
    %37 = vector.load %arg4[%c0_7, %c0_8, %c0_9] : memref<1x16x128xf32, #tpu.memory_space<vmem>>, vector<1x16x128xf32>
    tpu.vector_store %arg4[%c0_7, %c0_8, %c0_9], %36 {strides = array<i32>} : memref<1x16x128xf32, #tpu.memory_space<vmem>>, vector<1x16x128xf32>,
    return
  }
  func.func @transform_0(%arg0: i32) -> (i32, i32, i32) {
    %c0_i32 = arith.constant 0 : i32
    %c0_i32_0 = arith.constant 0 : i32
    %c0_i32_1 = arith.constant 0 : i32
    return %arg0, %c0_i32, %c0_i32_0 : i32, i32, i32
  }
  func.func @transform_1(%arg0: i32) -> (i32, i32) {
    %c0_i32 = arith.constant 0 : i32
    %c0_i32_0 = arith.constant 0 : i32
    %c0_i32_1 = arith.constant 0 : i32
    return %c0_i32, %c0_i32_0 : i32, i32
  }
  func.func @transform_2(%arg0: i32) -> (i32, i32) {
    %c0_i32 = arith.constant 0 : i32
    %c0_i32_0 = arith.constant 0 : i32
    %c0_i32_1 = arith.constant 0 : i32
    return %c0_i32, %c0_i32_0 : i32, i32
  }
  func.func @transform_3(%arg0: i32) -> (i32, i32, i32) {
    %c0_i32 = arith.constant 0 : i32
    %c0_i32_0 = arith.constant 0 : i32
    %c0_i32_1 = arith.constant 0 : i32
    return %arg0, %c0_i32, %c0_i32_0 : i32, i32, i32
  }
}

</mosaic_0001>

<bundles_post_ra>
// kernel: tpu_custom_call.1
= control target key start
LH: loop header
LB: loop body
LE: loop exit
PB: predicated region body
PF: predicated region fallthrough
CT: control target
= control target key end

     0   :  { %8 = vsyncpa [#allocation3], 0  ;;  %s1037_s0 = inlined_call_operand.vmem [shape: f32[2,32,4], index: 0, kind: input, shape index: {}]   ;;  %s1038_s1 = inlined_call_operand.vmem [shape: bf16[52,128], index: 1, kind: input, shape index: {}]   ;;  %s1039_s2 = inlined_call_operand.vmem [shape: f32[1,128], index: 2, kind: input, shape index: {}]   ;;  %s1040_s3 = inlined_call_operand.hbm [shape: f32[2,16,128], index: 3, kind: output, shape index: {}]  }
   0x1   :  { %10 = vsyncpa [#allocation3 + $0x1], 0  ;;  %s762_s12 = smov 0   ;;  %s764_s13 = smov 0  }
   0x2   :  { %s766_s14 = smov 0   ;;  %s768_s15 = smov 0  }
   0x3 LB: > { %s783_s16 = sadd.s32 4294967295, %s726_s15   ;;  %s570_s17 = sadd.s32 4294967294, %s726_s15   ;;  %s726_s15 = sphi %s768_s15, %s1046_s15   ;;  %s722_s14 = sphi %s766_s14, %s1045_s14   ;;  %s718_s13 = sphi %s764_s13, %s1044_s13   ;;  %s714_s12 = sphi %s762_s12, %s1043_s12  }
   0x4   : > { %s787_s18 = sadd.s32 1, %s726_s15   ;;  %s91_s19 = sadd.s32 1, %s722_s14 }
   0x5   : > { %s88_s20 = ssub.s32 %s726_s15, %s787_s18  ;;  %p101_p0 = scmp.ne.s32.totalorder %s722_s14, %s718_s13 }
   0x6   : > { %p89_p1 = scmp.eq.s32.totalorder %s88_s20, 0  ;;  %p102_p2 = scmp.eq.s32.totalorder %s783_s16, 1 }
   0x7   : > { %p107_p3 = scmp.ne.s32.totalorder %s718_s13, %s714_s12  ;;  %p108_p4 = scmp.eq.s32.totalorder %s570_s17, 1 }
   0x8   : > { %s798_s21 = scalar_select %p89_p1, %s722_s14, %s91_s19  }
   0x9   : > { %p800_p5 = por %p102_p2, %p101_p0  ;;  %p804_p6 = por %p108_p4, %p107_p3 }
   0xa   : > { %p573_p7 = scmp.ge.s32.totalorder %s726_s15, 1  ;;  %p140_p8 = scmp.lt.s32.totalorder %s726_s15, 3 }
   0xc   : > { %p141_p9 = pnand %p573_p7, %p140_p8 }
   0xd   : > { %p164_p10 = scmp.lt.s32.totalorder (!%p141_p9), %s783_s16, 1  ;;  %s728_s29 = smov (!%p141_p9), 8  }
   0xe   : > { %144 = sbr.rel (%p141_p9) target bundleno = 409 (0x199), region = 32  ;;  %s729_s30 = smov (!%p141_p9), 4  }
   0xf   : > { %s730_s4 = smov (!%p141_p9), 12   ;;  %s731_s5 = smov (!%p141_p9), 16  }
  0x10   : > { %s732_s6 = smov (!%p141_p9), 20   ;;  %s733_s9 = smov (!%p141_p9), 24  }
  0x11   : > { %s734_s17 = smov (!%p141_p9), 28   ;;  %s736_s27 = smov (!%p141_p9), 36  }
  0x12   : > { %s590_s11 = sshll.u32 (!%p141_p9), %s783_s16, 8 }
  0x13   : > { %v180_v0 = vlaneseq  ;;  %s165_s24 = scalar_select %p164_p10, %s783_s16, 1  ;;  %vm439_vm7 = vcmask 1041408   ;;  %vm337_vm8 = vcmask 31744   ;;  %vm344_vm9 = vcmask 64512  }
  0x14   : > { %vm349_vm10 = vcmask 97280   ;;  %vm354_vm11 = vcmask 130048   ;;  %vm359_vm12 = vcmask 162816   ;;  %vm364_vm13 = vcmask 195584   ;;  %s994_s20 = scalar_lea.hbm %s1040_s3, %s590_s11  ;;  %s740_s16 = smov [#allocation2]  }
  0x15   : > { %v812_v1 = vshrl.u32 %v180_v0, 7  ;;  %s589_s25 = sshll.u32 %s165_s24, 5  ;;  %s735_s24 = smov 32   ;;  %vm369_vm14 = vcmask 228352   ;;  %vm374_vm15 = vcmask 261120  }
  0x16   : > { %s168_s28 = scalar_lea.vmem %s1037_s0, %s589_s25  ;;  %s670_s26 = sshll.u32 %s740_s16, 4  ;;  %s671_s26 = int_to_ptr.vmem [resolvable:$false] %s670_s26 }
  0x17   : > { %v817_v2 = vld [vmem:[%s168_s28] sm:$0xff]  ;;  %v819_v3 = vld [vmem:[%s168_s28 + $0x8] sm:$0xff]  ;;  %v821_v4 = vld [vmem:[%s168_s28 + $0x10] sm:$0xff]  ;;  %vm193_vm0 = vcmp.lt.s32.totalorder %v812_v1, 6  ;;  %vm182_vm1 = vcmp.lt.s32.totalorder %v812_v1, 7  ;;  %vm204_vm2 = vcmp.lt.s32.totalorder %v812_v1, 5 }
  0x18   : > { %v825_v5 = vld [vmem:[%s168_s28 + $0x18] sm:$0xff]  ;;  %v189_v6 = vrot.slane %v817_v2, 2  ;;  %v190_v7 = vrot.slane %v819_v3, 2  ;;  %v191_v8 = vrot.slane %v821_v4, 2  ;;  %v176_v9 = vrot.slane %v817_v2, 1  ;;  %s737_s28 = smov 40  }
  0x19   : > { %v192_v10 = vrot.slane %v825_v5, 2  ;;  %v177_v11 = vrot.slane %v819_v3, 1  ;;  %v178_v12 = vrot.slane %v821_v4, 1  ;;  %v179_v13 = vrot.slane %v825_v5, 1 }
  0x1a   : > { %v835_v14 = vsel %vm193_vm0, %v190_v7, %v191_v8  ;;  %v837_v15 = vsel %vm193_vm0, %v189_v6, %v190_v7  ;;  %v200_v22 = vrot.slane %v817_v2, 3  ;;  %v202_v23 = vrot.slane %v821_v4, 3 }
  0x1b   : > { %v839_v16 = vsel %vm193_vm0, %v191_v8, %v192_v10  ;;  %v841_v17 = vsel %vm193_vm0, %v192_v10, %v189_v6  ;;  %v198_v18 = vpack.c.bf16 %v835_v14, %v837_v15  ;;  %v847_v19 = vsel %vm182_vm1, %v178_v12, %v179_v13 }
  0x1c   : > { %v851_v20 = vsel %vm182_vm1, %v177_v11, %v178_v12  ;;  %v855_v21 = vsel %vm182_vm1, %v176_v9, %v177_v11  ;;  %v862_v24 = vsel %vm182_vm1, %v179_v13, %v176_v9  ;;  %v199_v26 = vpack.c.bf16 %v841_v17, %v839_v16 }
  0x1d   : > { %273 = vrot.lane.b32.xlu1 %v198_v18, %s728_s29  ;;  %v187_v25 = vpack.c.bf16 %v851_v20, %v855_v21  ;;  %v188_v27 = vpack.c.bf16 %v862_v24, %v847_v19  ;;  %v203_v28 = vrot.slane %v825_v5, 3  ;;  %v201_v29 = vrot.slane %v819_v3, 3  ;;  %v662_v18 = vld [vmem:[%s1038_s1 + $0x18] ss:$0 sps:$4 sm:$0x33]  }
  0x1e   : > { %vm215_vm3 = vcmp.lt.s32.totalorder %v812_v1, 4  ;;  %v211_v30 = vrot.slane %v817_v2, 4  ;;  %v213_v31 = vrot.slane %v821_v4, 4  ;;  %v214_v32 = vrot.slane %v825_v5, 4  ;;  %609 = vmatprep.subr.msk.bf16.mxu0 %vm439_vm7, %v662_v18 }
  0x1f   : > { %267 = vrot.lane.b32.xlu0 %v187_v25, %s729_s30  ;;  %v212_v33 = vrot.slane %v819_v3, 4  ;;  %v878_v34 = vsel %vm204_vm2, %v202_v23, %v203_v28  ;;  %v880_v35 = vsel %vm204_vm2, %v203_v28, %v200_v22  ;;  %v882_v36 = vsel %vm204_vm2, %v201_v29, %v202_v23 }
  0x20   : > { %v884_v37 = vsel %vm204_vm2, %v200_v22, %v201_v29  ;;  %v210_v38 = vpack.c.bf16 %v880_v35, %v878_v34  ;;  %v891_v39 = vsel %vm215_vm3, %v213_v31, %v214_v32  ;;  %v895_v40 = vsel %vm215_vm3, %v214_v32, %v211_v30 }
  0x21   : > { %275 = vrot.lane.b32.xlu1 %v199_v26, %s728_s29  ;;  %v222_v41 = vrot.slane %v817_v2, 5  ;;  %v209_v42 = vpack.c.bf16 %v882_v36, %v884_v37  ;;  %v224_v43 = vrot.slane %v821_v4, 5  ;;  %v225_v44 = vrot.slane %v825_v5, 5 }
  0x22   : > { %vm226_vm4 = vcmp.lt.s32.totalorder %v812_v1, 3  ;;  %v905_v45 = vsel %vm215_vm3, %v212_v33, %v213_v31  ;;  %v909_v46 = vsel %vm215_vm3, %v211_v30, %v212_v33  ;;  %v223_v47 = vrot.slane %v819_v3, 5  ;;  %v664_v30 = vld [vmem:[%s1038_s1 + $0x8] sm:$0xff]   ;;  %v665_v33 = vld [vmem:[%s1038_s1] sm:$0xff]  }
  0x23   : > { %269 = vrot.lane.b32.xlu0 %v188_v27, %s729_s30  ;;  %v221_v48 = vpack.c.bf16 %v895_v40, %v891_v39  ;;  %v235_v49 = vrot.slane %v821_v4, 6  ;;  %v236_v50 = vrot.slane %v825_v5, 6  ;;  %v227_v51 = vsel %vm226_vm4, %v224_v43, %v225_v44  ;;  %v663_v27 = vld [vmem:[%s1038_s1 + $0x10] sm:$0xff]   ;;  %s738_s30 = smov 44  }
  0x24   : > { %v230_v52 = vsel %vm226_vm4, %v225_v44, %v222_v41  ;;  %v233_v53 = vrot.slane %v817_v2, 6  ;;  %vm237_vm5 = vcmp.lt.s32.totalorder %v812_v1, 2  ;;  %v220_v54 = vpack.c.bf16 %v905_v45, %v909_v46 }
  0x25   : > { %281 = vrot.lane.b32.xlu1 %v210_v38, %s730_s4  ;;  %v234_v55 = vrot.slane %v819_v3, 6  ;;  %v228_v56 = vsel %vm226_vm4, %v223_v47, %v224_v43  ;;  %v229_v57 = vsel %vm226_vm4, %v222_v41, %v223_v47  ;;  %v232_v58 = vpack.c.bf16 %v230_v52, %v227_v51 }
  0x26   : > { %v238_v59 = vsel %vm237_vm5, %v235_v49, %v236_v50  ;;  %v241_v60 = vsel %vm237_vm5, %v236_v50, %v233_v53  ;;  %v244_v61 = vrot.slane %v817_v2, 7  ;;  %v246_v62 = vrot.slane %v821_v4, 7 }
  0x27   : > { %279 = vrot.lane.b32.xlu0 %v209_v42, %s730_s4  ;;  %v247_v63 = vrot.slane %v825_v5, 7  ;;  %v231_v0 = vpack.c.bf16 %v228_v56, %v229_v57  ;;  %v239_v6 = vsel %vm237_vm5, %v234_v55, %v235_v49  ;;  %vm248_vm6 = vcmp.lt.s32.totalorder %v812_v1, 1  ;;  %s739_s4 = smov 48  }
  0x28   : > { %v240_v7 = vsel %vm237_vm5, %v233_v53, %v234_v55  ;;  %v245_v8 = vrot.slane %v819_v3, 7  ;;  %v174_v9 = vpack.c.bf16 %v819_v3, %v817_v2  ;;  %v175_v10 = vpack.c.bf16 %v825_v5, %v821_v4 }
  0x29   : > { %287 = vrot.lane.b32.xlu1 %v221_v48, %s731_s5  ;;  %v243_v11 = vpack.c.bf16 %v241_v60, %v238_v59  ;;  %v249_v12 = vsel %vm248_vm6, %v246_v62, %v247_v63  ;;  %v252_v13 = vsel %vm248_vm6, %v247_v63, %v244_v61  ;;  %v242_v1 = vpack.c.bf16 %v239_v6, %v240_v7 }
  0x2a   : > { %v250_v22 = vsel %vm248_vm6, %v245_v8, %v246_v62  ;;  %v251_v23 = vsel %vm248_vm6, %v244_v61, %v245_v8  ;;  %v441_v25 = vsel %vm439_vm7, %v662_v18, 0  ;;  %v254_v26 = vpack.c.bf16 %v252_v13, %v249_v12 }
  0x2b   : > { %285 = vrot.lane.b32.xlu0 %v220_v54, %s731_s5  ;;  %598 = vmatpush3.bf16.msra.mxu0 %v441_v25  ;;  %v253_v28 = vpack.c.bf16 %v250_v22, %v251_v23  ;;  %v256_v29 = vpack.c.bf16 %v817_v2, %v825_v5  ;;  %v255_v31 = vpack.c.bf16 %v821_v4, %v819_v3  ;;  %vm379_vm0 = vcmask 293888   ;;  %s161_s5 = sand.u32 1, %s718_s13  }
  0x2c   : > { %599 = vmatprep.subr.bf16.mxu0 %v663_v27  ;;  %v258_v32 = vpack.c.bf16 %v855_v21, %v862_v24  ;;  %v257_v38 = vpack.c.bf16 %v847_v19, %v851_v20  ;;  %v260_v41 = vpack.c.bf16 %v837_v15, %v841_v17  ;;  %v259_v21 = vpack.c.bf16 %v839_v16, %v835_v14  ;;  %s574_s8 = sshll.u32 %s161_s5, 4 }
  0x2d   : > { %293 = vrot.lane.b32.xlu1 %v232_v58, %s732_s6  ;;  %v262_v24 = vpack.c.bf16 %v884_v37, %v880_v35  ;;  %v261_v19 = vpack.c.bf16 %v878_v34, %v882_v36  ;;  %v264_v15 = vpack.c.bf16 %v909_v46, %v895_v40  ;;  %v263_v17 = vpack.c.bf16 %v891_v39, %v905_v45 }
  0x2e   : > { %vm384_vm1 = vcmask 326656   ;;  %vm389_vm2 = vcmask 359424   ;;  %vm394_vm3 = vcmask 392192   ;;  %vm434_vm4 = vcmask 424960  }
  0x2f   : > { %291 = vrot.lane.b32.xlu0 %v231_v0, %s732_s6  ;;  %600 = vmatpush3.bf16.msra.mxu0 %v663_v27 }
  0x30   : > { %601 = vmatprep.subr.bf16.mxu0 %v664_v30 }
  0x31   : > { %299 = vrot.lane.b32.xlu1 %v243_v11, %s733_s9 }
  0x33   : > { %297 = vrot.lane.b32.xlu0 %v242_v1, %s733_s9  ;;  %602 = vmatpush3.bf16.msra.mxu0 %v664_v30  ;;  %s163_s9 = scalar_lea.vmem [#allocation2], %s574_s8 }
  0x34   : > { %603 = vmatprep.subr.bf16.mxu0 %v665_v33  ;;  %s508_s10 = sshll.u32 %s163_s9, 4  ;;  %s989_s10 = int_to_ptr.vmem [resolvable:$true] %s508_s10 }
  0x35   : > { %305 = vrot.lane.b32.xlu1 %v254_v26, %s734_s17  ;;  %v577_v26 = vld [vmem:[%s1039_s2] ss:$0 sm:$0xff]  ;;  %s666_s25 = scalar_lea.vmem %s989_s10, 256  ;;  %p673_p0 = scmp.lt.s32.totalorder %s989_s10, %s671_s26 }
  0x36   : > { %p667_p11 = scmp.ne.s32.totalorder %s989_s10, %s666_s25 }
  0x37   : > { %303 = vrot.lane.b32.xlu0 %v253_v28, %s734_s17  ;;  %604 = vmatpush3.bf16.msra.mxu0 %v665_v33 }
  0x38   : > { %p668_p12 = pnand %p667_p11, %p800_p5 }
  0x39   : > { %311 = vrot.lane.b32.xlu1 %v256_v29, %s735_s24 }
  0x3a   : > { %p669_p13 = pneg %p668_p12 }
  0x3b   : > { %309 = vrot.lane.b32.xlu0 %v255_v31, %s735_s24  ;;  %s996_s24 = scalar_lea.sflag [#allocation3], %s161_s5 }
  0x3d   : > { %317 = vrot.lane.b32.xlu1 %v258_v32, %s736_s27 }
  0x3f   : > { %315 = vrot.lane.b32.xlu0 %v257_v38, %s736_s27  ;;  %s672_s27 = scalar_lea.vmem %s671_s26, 512 }
  0x40   : > { %p674_p1 = scmp.lt.s32.totalorder %s672_s27, %s666_s25 }
  0x41   : > { %323 = vrot.lane.b32.xlu1 %v260_v41, %s737_s28 }
  0x42   : > { %p675_p2 = por %p674_p1, %p673_p0 }
  0x43   : > { %321 = vrot.lane.b32.xlu0 %v259_v21, %s737_s28 }
  0x44   : > { %p676_p3 = pnand %p675_p2, %p669_p13 }
  0x45   : > { %329 = vrot.lane.b32.xlu1 %v262_v24, %s738_s30 }
  0x47   : > { %327 = vrot.lane.b32.xlu0 %v261_v19, %s738_s30 }
  0x49   : > { %335 = vrot.lane.b32.xlu1 %v264_v15, %s739_s4 }
  0x4b   : > { %333 = vrot.lane.b32.xlu0 %v263_v17, %s739_s4 }
  0x8f   : > { %v274_v14 = vpop.permute.xlu1 %273 }
  0x91   : > { %v268_v16 = vpop.permute.xlu0 %267 }
  0x92   : > { %v340_v51 = vsel %vm337_vm8, %v174_v9, %v268_v16 }
  0x93   : > { %v276_v20 = vpop.permute.xlu1 %275  ;;  %v346_v56 = vsel %vm344_vm9, %v340_v51, %v274_v14 }
  0x95   : > { %v270_v35 = vpop.permute.xlu0 %269 }
  0x96   : > { %v343_v45 = vsel %vm337_vm8, %v175_v10, %v270_v35 }
  0x97   : > { %v282_v37 = vpop.permute.xlu1 %281  ;;  %v348_v53 = vsel %vm344_vm9, %v343_v45, %v276_v20 }
  0x98   : > { %v353_v55 = vsel %vm349_vm10, %v348_v53, %v282_v37 }
  0x99   : > { %v280_v42 = vpop.permute.xlu0 %279 }
  0x9a   : > { %v351_v57 = vsel %vm349_vm10, %v346_v56, %v280_v42 }
  0x9b   : > { %v288_v43 = vpop.permute.xlu1 %287 }
  0x9c   : > { %v358_v58 = vsel %vm354_vm11, %v353_v55, %v288_v43 }
  0x9d   : > { %v286_v34 = vpop.permute.xlu0 %285 }
  0x9e   : > { %v356_v4 = vsel %vm354_vm11, %v351_v57, %v286_v34 }
  0x9f   : > { %v294_v36 = vpop.permute.xlu1 %293 }
  0xa0   : > { %v363_v5 = vsel %vm359_vm12, %v358_v58, %v294_v36 }
  0xa1   : > { %v292_v44 = vpop.permute.xlu0 %291 }
  0xa2   : > { %v361_v60 = vsel %vm359_vm12, %v356_v4, %v292_v44 }
  0xa3   : > { %v300_v47 = vpop.permute.xlu1 %299 }
  0xa4   : > { %v368_v2 = vsel %vm364_vm13, %v363_v5, %v300_v47 }
  0xa5   : > { %v298_v48 = vpop.permute.xlu0 %297 }
  0xa6   : > { %v366_v61 = vsel %vm364_vm13, %v361_v60, %v298_v48 }
  0xa7   : > { %v306_v40 = vpop.permute.xlu1 %305 }
  0xa8   : > { %v373_v62 = vsel %vm369_vm14, %v368_v2, %v306_v40 }
  0xa9   : > { %v304_v46 = vpop.permute.xlu0 %303 }
  0xaa   : > { %v371_v63 = vsel %vm369_vm14, %v366_v61, %v304_v46 }
  0xab   : > { %v312_v49 = vpop.permute.xlu1 %311 }
  0xac   : > { %v378_v0 = vsel %vm374_vm15, %v373_v62, %v312_v49 }
  0xad   : > { %v310_v50 = vpop.permute.xlu0 %309 }
  0xae   : > { %v376_v7 = vsel %vm374_vm15, %v371_v63, %v310_v50 }
  0xaf   : > { %v318_v39 = vpop.permute.xlu1 %317 }
  0xb0   : > { %v383_v8 = vsel %vm379_vm0, %v378_v0, %v318_v39 }
  0xb1   : > { %v316_v52 = vpop.permute.xlu0 %315 }
  0xb2   : > { %v381_v9 = vsel %vm379_vm0, %v376_v7, %v316_v52 }
  0xb3   : > { %v324_v54 = vpop.permute.xlu1 %323 }
  0xb4   : > { %v388_v10 = vsel %vm384_vm1, %v383_v8, %v324_v54 }
  0xb5   : > { %v322_v59 = vpop.permute.xlu0 %321 }
  0xb6   : > { %v386_v12 = vsel %vm384_vm1, %v381_v9, %v322_v59 }
  0xb7   : > { %v330_v3 = vpop.permute.xlu1 %329 }
  0xb8   : > { %v393_v13 = vsel %vm389_vm2, %v388_v10, %v330_v3 }
  0xb9   : > { %v328_v6 = vpop.permute.xlu0 %327 }
  0xba   : > { %v391_v18 = vsel %vm389_vm2, %v386_v12, %v328_v6 }
  0xbb   : > { %v336_v11 = vpop.permute.xlu1 %335 }
  0xbc   : > { %v398_v1 = vsel %vm394_vm3, %v393_v13, %v336_v11 }
  0xbd   : > { %v334_v22 = vpop.permute.xlu0 %333 }
  0xbe   : > { %v396_v23 = vsel %vm394_vm3, %v391_v18, %v334_v22 }
  0xbf   : > { %605 = vmatprep.mubr.msk.bf16.mxu0 %vm434_vm4, %v396_v23 }
  0xc0   : > { %606 = vmatmul.mubr.msk.bf16.vlgmr.msra.gmra.mxu0 %vm434_vm4, %v398_v1 }
 0x180   : > { %v607_v25 = vpop.f32.mrf.mxu0 }
 0x182   : > { %v477_v27 = vpop.f32.mrf.mxu0 }
 0x183   : > { %v478_v28 = vadd.f32 %v577_v26, %v477_v27 }
 0x184   : > { %v608_v29 = vpop.f32.mrf.mxu0 }
 0x185   : > { %v490_v30 = vmax.f32 %v478_v28, 0.0 }
 0x186   : > { %v480_v31 = vpop.f32.mrf.mxu0 }
 0x187   : > { %492 = vst [vmem:[%s163_s9] sm:$0xff] %v490_v30  ;;  %v481_v32 = vadd.f32 %v577_v26, %v480_v31 }
 0x189   : > { %v491_v33 = vmax.f32 %v481_v32, 0.0 }
 0x18b   : > { %493 = vst [vmem:[%s163_s9 + $0x8] sm:$0xff] %v491_v33 }
 0x18c   : > { %679 = shalt.err (!%p676_p3)
}
 0x18d   : > { %s680_s28 = scalar_lea.hbm %s994_s20, 256  ;;  %s684_s5 = scalar_lea.hbm %s1040_s3, 512 }
 0x18e   : > { %p681_p4 = scmp.ne.s32.totalorder %s994_s20, %s680_s28  ;;  %p685_p9 = scmp.lt.s32.totalorder %s994_s20, %s1040_s3 }
 0x18f   : > { %p686_p10 = scmp.lt.s32.totalorder %s684_s5, %s680_s28 }
 0x190   : > { %p682_p7 = pnand %p681_p4, %p800_p5 }
 0x191   : > { %p687_p11 = por %p686_p10, %p685_p9 }
 0x192   : > { %p683_p8 = pneg %p682_p7 }
 0x194   : > { %p688_p12 = pnand %p687_p11, %p683_p8 }
 0x196   : > { %691 = shalt.err (!%p688_p12)
}
 0x197   : > { %s741_s8 = smov 128  }
 0x198   : > { %610 = dma.vmem_to_hbm [thread:$0]  (%p800_p5), %s989_s10, 256, %s994_s20, %s996_s24, %s741_s8, %s741_s8, %s728_s29  }
 0x199 PF: > { %p616_p13 = scmp.ge.s32.totalorder %s726_s15, 2  ;;  %s523_s9 = sand.u32 1, %s714_s12  }
 0x19a   : > { %s524_s11 = scalar_lea.sflag [#allocation3], %s523_s9 }
 0x19b   : > { %p613_p0 = pnand %p616_p13, %p804_p6 }
 0x19d   : > { %p614_p1 = pneg %p613_p0 }
 0x19f   : > { %709 = dma.done.wait (%p614_p1), %s524_s11, 256  }
 0x1a0   : > { %711 = vsyncadd (%p614_p1), %s524_s11, 4294967040  ;;  %p13_p2 = scmp.ge.s32.totalorder %s787_s18, 4   ;;  %s1043_s12 = smov %s718_s13 }
 0x1a1   : > { %s1044_s13 = smov %s722_s14  ;;  %s1045_s14 = smov %s798_s21 }
 0x1a2   : > { %s1046_s15 = smov %s787_s18  ;;  %15 = sbr.rel (!%p13_p2) target bundleno = 3 (0x3), region = 67 }
 0x1a7   :  { %529 = vsyncpa [#allocation3], 1 }
 0x1a8   :  { %531 = vsyncpa [#allocation3 + $0x1], 1 }

</bundles_post_ra>
